<compile_context>
chip_gen: v7x
topology: tpu7x:2x2x1
jax: 0.10.0
libtpu: 0.0.40
codegen_flags: <defaults>
</compile_context>

<pallas_src>
import functools

import jax
import jax.numpy as jnp
from jax import lax
from jax.experimental import pallas as pl
from jax.experimental.pallas import tpu as pltpu

LANE = 128


def _round_up(x, m):
    return ((x + m - 1) // m) * m


def _fused_embed_kernel(
    mpnn_ref,        # (TB, Dm)        f32 activation tile
    rdkit_ref,       # (TB, Dr_full)   f32 activation tile (selection folded into wp)
    mg_ref, mb_ref,  # (1, Dm)         f32 mpnn LayerNorm gamma / beta
    wp_ref,          # (Dr_full, Dp*)  f32 projection weight (unselected rows = 0)
    bp_ref,          # (1, Dp*)        f32 projection bias (padded cols = 0)
    rg_ref, rb_ref,  # (1, Dp*)        f32 rdkit LayerNorm gamma / beta (padded cols = 0)
    w1a_ref,         # (Dm, H*)        bf16 fusion layer-1 weight, mpnn half
    w1b_ref,         # (Dp*, H*)       bf16 fusion layer-1 weight, rdkit half
    b1_ref,          # (1, H*)         f32 (padded cols = 0)
    w2_ref,          # (H*, O*)        bf16 fusion layer-2 weight
    b2_ref,          # (1, O*)         f32 (padded cols = 0)
    out_ref,         # (TB, O*)
    *, proj_dim,
):
    eps = jnp.float32(1e-5)

    # --- LayerNorm(mpnn_out): two-pass (x - mu)^2, f32 math ---
    x = mpnn_ref[...].astype(jnp.float32)
    mu = jnp.mean(x, axis=-1, keepdims=True)
    xc = x - mu
    var = jnp.mean(xc * xc, axis=-1, keepdims=True)
    x_n = xc * lax.rsqrt(var + eps) * mg_ref[...] + mb_ref[...]

    # --- rdkit projection (column selection folded into wp), f32 MXU ---
    # Padded columns of p are exactly 0 (wp/bp zero-padded).  The lane mask
    # keeps the centered values of the padded lanes at 0 so the two-pass
    # variance over the *real* proj_dim is exact, and zero-padded gamma/beta
    # keep the padded lanes of p_n at exactly 0.
    p = jnp.dot(rdkit_ref[...].astype(jnp.float32), wp_ref[...],
                preferred_element_type=jnp.float32) + bp_ref[...]
    inv_dp = jnp.float32(1.0 / proj_dim)
    mu2 = jnp.sum(p, axis=-1, keepdims=True) * inv_dp
    lane = lax.broadcasted_iota(jnp.int32, p.shape, 1)
    pc = jnp.where(lane < proj_dim, p - mu2, 0.0)
    var2 = jnp.sum(pc * pc, axis=-1, keepdims=True) * inv_dp
    p_n = pc * lax.rsqrt(var2 + eps) * rg_ref[...] + rb_ref[...]

    # --- fusion MLP: Linear(concat([x_n, p_n]) -> H) == split matmul ---
    # bf16 MXU operands are safe here (post-LayerNorm, well-scaled).
    h = (jnp.dot(x_n.astype(jnp.bfloat16), w1a_ref[...],
                 preferred_element_type=jnp.float32)
         + jnp.dot(p_n.astype(jnp.bfloat16), w1b_ref[...],
                   preferred_element_type=jnp.float32)
         + b1_ref[...])
    h = jnp.maximum(h, 0.0)  # ReLU (padded cols stay 0)

    # --- Linear(H -> O); padded output cols stay exactly 0 ---
    out_ref[...] = (jnp.dot(h.astype(jnp.bfloat16), w2_ref[...],
                            preferred_element_type=jnp.float32)
                    + b2_ref[...]).astype(out_ref.dtype)


def fused_molecule_embedding(mpnn_out, rdkit_tensor, kparams, *,
                             block_b=1024, out_dtype=jnp.float32):
    """Normalization-based fusion forward on TPU via a single gridded kernel.

    mpnn_out:     (B, mpnn_dim)    precomputed MPNN output (f32, streamed as-is)
    rdkit_tensor: (B, rdkit_full)  full RDKit descriptor tensor (selection is
                                   folded into the projection weight)
    kparams:      dict from prepare_kernel_params (padded / folded)

    Returns the lane-padded (B, O*) embedding; columns >= output_dim are
    exactly zero, so downstream consumers may use the padded layout directly
    (avoids a separate XLA slice/copy on the hot path).
    """
    B, dm = mpnn_out.shape
    dr_full = rdkit_tensor.shape[1]
    dp_pad = kparams["wp"].shape[1]
    h_pad = kparams["w2"].shape[0]
    o_pad = kparams["w2"].shape[1]

    # Batch tile: large enough to amortize the ~0.35us/step overhead, small
    # enough that (a) f32 intermediates fit scoped VMEM on every generation
    # and (b) the batch grid has >= 2 steps so "parallel" can use both
    # TensorCores on v7x.  Ragged last block -> no wrapper-side batch padding.
    tb = min(block_b, max(8, _round_up(pl.cdiv(B, 2), 8)))
    grid = (pl.cdiv(B, tb),)

    def act_spec(width):
        return pl.BlockSpec((tb, width), lambda i: (i, 0))

    def resident(shape):
        # Constant index_map -> fetched once, VMEM-resident across the grid;
        # Buffered(1) avoids a pointless second pipeline buffer per weight.
        return pl.BlockSpec(shape, lambda i: (0, 0),
                            pipeline_mode=pl.Buffered(1))

    weight_order = ("mg", "mb", "wp", "bp", "rg", "rb",
                    "w1a", "w1b", "b1", "w2", "b2")
    weights = tuple(kparams[k] for k in weight_order)

    # Per-step VMEM footprint -> explicit scoped-VMEM limit (with 2x margin),
    # floored at 32 MiB and capped at 64 MiB (v7x physical).
    weight_bytes = sum(int(w.size) * w.dtype.itemsize for w in weights)
    act_bytes = 2 * tb * (dm + dr_full) * 4            # double-buffered f32 inputs
    out_bytes = 2 * tb * o_pad * jnp.dtype(out_dtype).itemsize
    inter_bytes = tb * (2 * dm + 2 * dp_pad + h_pad + o_pad) * 4
    vmem_limit = int(min(64 << 20,
                         max(32 << 20,
                             2 * (act_bytes + out_bytes + inter_bytes
                                  + weight_bytes))))

    kernel = functools.partial(_fused_embed_kernel,
                               proj_dim=kparams["proj_dim"])

    out_padded = pl.pallas_call(
        kernel,
        grid=grid,
        in_specs=[act_spec(dm), act_spec(dr_full)]
                 + [resident(w.shape) for w in weights],
        out_specs=pl.BlockSpec((tb, o_pad), lambda i: (i, 0)),
        out_shape=jax.ShapeDtypeStruct((B, o_pad), out_dtype),
        compiler_params=pltpu.CompilerParams(
            dimension_semantics=("parallel",),
            vmem_limit_bytes=vmem_limit),
    )(mpnn_out, rdkit_tensor, *weights)

    return out_padded


def make_params(key, mpnn_dim, rdkit_sel_dim, hidden_dim, output_dim,
                projection_ratio=0.5):
    """Logical (unpadded, f32) parameters matching the module's __init__."""
    proj_dim = int(mpnn_dim * projection_ratio)
    fused_dim = mpnn_dim + proj_dim
    ks = jax.random.split(key, 3)

    def lin(k, fan_in, fan_out):
        bound = 1.0 / (fan_in ** 0.5)
        kw, kb = jax.random.split(k)
        w = jax.random.uniform(kw, (fan_in, fan_out), jnp.float32, -bound, bound)
        b = jax.random.uniform(kb, (fan_out,), jnp.float32, -bound, bound)
        return w, b

    wp, bp = lin(ks[0], rdkit_sel_dim, proj_dim)
    w1, b1 = lin(ks[1], fused_dim, hidden_dim)
    w2, b2 = lin(ks[2], hidden_dim, output_dim)
    return {
        "wp": wp, "bp": bp,
        "w1": w1, "b1": b1,
        "w2": w2, "b2": b2,
        "mpnn_gamma": jnp.ones((mpnn_dim,), jnp.float32),
        "mpnn_beta": jnp.zeros((mpnn_dim,), jnp.float32),
        "rd_gamma": jnp.ones((proj_dim,), jnp.float32),
        "rd_beta": jnp.zeros((proj_dim,), jnp.float32),
        "mpnn_dim": mpnn_dim, "proj_dim": proj_dim,
        "hidden_dim": hidden_dim, "output_dim": output_dim,
    }


def prepare_kernel_params(params, selected_idx, rdkit_full_dim):
    """Pad feature axes to 128 lanes, fold the RDKit column selection into the
    projection weight, and cast fusion matmul weights to bf16 (one-time)."""
    mpnn_dim = params["mpnn_dim"]
    proj_dim = params["proj_dim"]
    hidden = params["hidden_dim"]
    out_dim = params["output_dim"]
    dp_pad = _round_up(proj_dim, LANE)
    h_pad = _round_up(hidden, LANE)
    o_pad = _round_up(out_dim, LANE)

    def pad_cols(a, n):
        return jnp.pad(a, ((0, 0), (0, n - a.shape[1])))

    def pad_rows(a, n):
        return jnp.pad(a, ((0, n - a.shape[0]), (0, 0)))

    def row(v, n):  # (d,) -> zero-padded (1, n)
        return jnp.pad(v, (0, n - v.shape[0])).reshape(1, n)

    # rdkit_full @ wp_scattered == selected_columns(rdkit_full) @ wp
    # (kept in f32: raw RDKit descriptors can have a wide dynamic range)
    wp_pad = pad_cols(params["wp"], dp_pad)                     # (Dr_sel, Dp*)
    wp_sel = jnp.zeros((rdkit_full_dim, dp_pad), jnp.float32)
    wp_sel = wp_sel.at[selected_idx].set(wp_pad)                # (Dr_full, Dp*)

    w1 = params["w1"]
    w1a = pad_cols(w1[:mpnn_dim], h_pad)                        # (Dm, H*)
    w1b = pad_rows(pad_cols(w1[mpnn_dim:], h_pad), dp_pad)      # (Dp*, H*)
    w2 = pad_rows(pad_cols(params["w2"], o_pad), h_pad)         # (H*, O*)

    bf = lambda a: a.astype(jnp.bfloat16)
    return {
        "mg": params["mpnn_gamma"].reshape(1, mpnn_dim),
        "mb": params["mpnn_beta"].reshape(1, mpnn_dim),
        "wp": wp_sel,
        "bp": row(params["bp"], dp_pad),
        "rg": row(params["rd_gamma"], dp_pad),
        "rb": row(params["rd_beta"], dp_pad),
        "w1a": bf(w1a), "w1b": bf(w1b),
        "b1": row(params["b1"], h_pad),
        "w2": bf(w2),
        "b2": row(params["b2"], o_pad),
        "mpnn_dim": mpnn_dim, "proj_dim": proj_dim, "output_dim": out_dim,
    }


def reference_forward(mpnn_out, rdkit_tensor, params, selected_idx):
    """Pure-JAX (f32) reference of the PyTorch forward semantics."""
    eps = 1e-5

    def ln(x, g, b):
        mu = jnp.mean(x, -1, keepdims=True)
        var = jnp.mean((x - mu) ** 2, -1, keepdims=True)
        return (x - mu) * lax.rsqrt(var + eps) * g + b

    x_n = ln(mpnn_out, params["mpnn_gamma"], params["mpnn_beta"])
    selected = jnp.take(rdkit_tensor, selected_idx, axis=-1)
    p = selected @ params["wp"] + params["bp"]
    p_n = ln(p, params["rd_gamma"], params["rd_beta"])
    fused = jnp.concatenate([x_n, p_n], axis=-1)
    h = jnp.maximum(fused @ params["w1"] + params["b1"], 0.0)
    return h @ params["w2"] + params["b2"]


if __name__ == "__main__":
    key = jax.random.PRNGKey(0)
    k_in, k_rd, k_par = jax.random.split(key, 3)

    # Small shapes consistent with the module.
    B = 8                 # batch of molecules
    MPNN_DIM = 32         # mpnn.output_dim
    RDKIT_FULL = 24       # full rdkit descriptor width
    SELECTED = jnp.array([0, 2, 3, 5, 7, 8, 10, 11, 13, 15, 16, 18, 19, 20, 21, 23],
                         dtype=jnp.int32)   # selected_rdkit_features -> 16 columns
    HIDDEN = 64
    OUTPUT = 32

    params = make_params(k_par, MPNN_DIM, int(SELECTED.shape[0]),
                         HIDDEN, OUTPUT, projection_ratio=0.5)
    kparams = prepare_kernel_params(params, SELECTED, RDKIT_FULL)

    # molgraphs -> mpnn(molgraphs) output is taken as a precomputed tensor.
    mpnn_out = jax.random.normal(k_in, (B, MPNN_DIM), jnp.float32)
    rdkit_tensor = jax.random.normal(k_rd, (B, RDKIT_FULL), jnp.float32)

    out_padded = fused_molecule_embedding(mpnn_out, rdkit_tensor, kparams)
    out_padded = jax.block_until_ready(out_padded)

    ref = reference_forward(mpnn_out, rdkit_tensor, params, SELECTED)
    o_pad = kparams["w2"].shape[1]
    assert out_padded.shape == (B, o_pad), out_padded.shape
    # Padded columns are guaranteed exactly zero (consumer may keep the layout).
    assert bool(jnp.all(out_padded[:, OUTPUT:] == 0.0))
    out = out_padded[:, :OUTPUT]   # test-side slice for reference comparison only
    assert jnp.allclose(out, ref, atol=2e-2, rtol=2e-2), \
        float(jnp.max(jnp.abs(out - ref)))

    print("KERNEL_OK")
</pallas_src>

<mosaic_0001>
module attributes {stable_mosaic.version = 11 : i64} {
  func.func @_fused_embed_kernel(%arg0: i32, %arg1: memref<8x32xf32, #tpu.memory_space<vmem>>, %arg2: memref<8x24xf32, #tpu.memory_space<vmem>>, %arg3: memref<1x32xf32, #tpu.memory_space<vmem>>, %arg4: memref<1x32xf32, #tpu.memory_space<vmem>>, %arg5: memref<24x128xf32, #tpu.memory_space<vmem>>, %arg6: memref<1x128xf32, #tpu.memory_space<vmem>>, %arg7: memref<1x128xf32, #tpu.memory_space<vmem>>, %arg8: memref<1x128xf32, #tpu.memory_space<vmem>>, %arg9: memref<32x128xbf16, #tpu.memory_space<vmem>>, %arg10: memref<128x128xbf16, #tpu.memory_space<vmem>>, %arg11: memref<1x128xf32, #tpu.memory_space<vmem>>, %arg12: memref<128x128xbf16, #tpu.memory_space<vmem>>, %arg13: memref<1x128xf32, #tpu.memory_space<vmem>>, %arg14: memref<8x128xf32, #tpu.memory_space<vmem>>) attributes {dimension_semantics = [#tpu.dimension_semantics<parallel>], iteration_bounds = array<i64: 1>, scalar_prefetch = 0 : i64, scratch_operands = 0 : i64, tpu.core_type = #tpu.core_type<tc>, window_params = [{transform_indices = @transform_0, window_bounds = array<i64: 8, 32>}, {transform_indices = @transform_1, window_bounds = array<i64: 8, 24>}, {pipeline_mode = #tpu.pipeline_mode<synchronous>, transform_indices = @transform_2, window_bounds = array<i64: 1, 32>}, {pipeline_mode = #tpu.pipeline_mode<synchronous>, transform_indices = @transform_3, window_bounds = array<i64: 1, 32>}, {pipeline_mode = #tpu.pipeline_mode<synchronous>, transform_indices = @transform_4, window_bounds = array<i64: 24, 128>}, {pipeline_mode = #tpu.pipeline_mode<synchronous>, transform_indices = @transform_5, window_bounds = array<i64: 1, 128>}, {pipeline_mode = #tpu.pipeline_mode<synchronous>, transform_indices = @transform_6, window_bounds = array<i64: 1, 128>}, {pipeline_mode = #tpu.pipeline_mode<synchronous>, transform_indices = @transform_7, window_bounds = array<i64: 1, 128>}, {pipeline_mode = #tpu.pipeline_mode<synchronous>, transform_indices = @transform_8, window_bounds = array<i64: 32, 128>}, {pipeline_mode = #tpu.pipeline_mode<synchronous>, transform_indices = @transform_9, window_bounds = array<i64: 128, 128>}, {pipeline_mode = #tpu.pipeline_mode<synchronous>, transform_indices = @transform_10, window_bounds = array<i64: 1, 128>}, {pipeline_mode = #tpu.pipeline_mode<synchronous>, transform_indices = @transform_11, window_bounds = array<i64: 128, 128>}, {pipeline_mode = #tpu.pipeline_mode<synchronous>, transform_indices = @transform_12, window_bounds = array<i64: 1, 128>}, {transform_indices = @transform_13, window_bounds = array<i64: 8, 128>}]} {
    %c0 = arith.constant 0 : index
    %c0_0 = arith.constant 0 : index
    %0 = vector.load %arg1[%c0, %c0_0] : memref<8x32xf32, #tpu.memory_space<vmem>>, vector<8x32xf32>
    %cst = arith.constant dense<0.000000e+00> : vector<8xf32>
    %1 = vector.multi_reduction <add>, %0, %cst [1] : vector<8x32xf32> to vector<8xf32>
    %2 = vector.shape_cast %1 : vector<8xf32> to vector<8x1xf32>
    %cst_1 = arith.constant 3.200000e+01 : f32
    %3 = vector.broadcast %cst_1 : f32 to vector<8x1xf32>
    %4 = arith.divf %2, %3 : vector<8x1xf32>
    %5 = vector.broadcast %4 : vector<8x1xf32> to vector<8x32xf32>
    %6 = arith.subf %0, %5 : vector<8x32xf32>
    %7 = arith.mulf %6, %6 : vector<8x32xf32>
    %cst_2 = arith.constant dense<0.000000e+00> : vector<8xf32>
    %8 = vector.multi_reduction <add>, %7, %cst_2 [1] : vector<8x32xf32> to vector<8xf32>
    %9 = vector.shape_cast %8 : vector<8xf32> to vector<8x1xf32>
    %cst_3 = arith.constant 3.200000e+01 : f32
    %10 = vector.broadcast %cst_3 : f32 to vector<8x1xf32>
    %11 = arith.divf %9, %10 : vector<8x1xf32>
    %cst_4 = arith.constant 9.99999974E-6 : f32
    %12 = vector.broadcast %cst_4 : f32 to vector<8x1xf32>
    %13 = arith.addf %11, %12 : vector<8x1xf32>
    %14 = math.rsqrt %13 : vector<8x1xf32>
    %15 = vector.broadcast %14 : vector<8x1xf32> to vector<8x32xf32>
    %16 = arith.mulf %6, %15 : vector<8x32xf32>
    %c0_5 = arith.constant 0 : index
    %c0_6 = arith.constant 0 : index
    %17 = vector.load %arg3[%c0_5, %c0_6] : memref<1x32xf32, #tpu.memory_space<vmem>>, vector<1x32xf32>
    %18 = vector.broadcast %17 : vector<1x32xf32> to vector<8x32xf32>
    %19 = arith.mulf %16, %18 : vector<8x32xf32>
    %c0_7 = arith.constant 0 : index
    %c0_8 = arith.constant 0 : index
    %20 = vector.load %arg4[%c0_7, %c0_8] : memref<1x32xf32, #tpu.memory_space<vmem>>, vector<1x32xf32>
    %21 = vector.broadcast %20 : vector<1x32xf32> to vector<8x32xf32>
    %22 = arith.addf %19, %21 : vector<8x32xf32>
    %c0_9 = arith.constant 0 : index
    %c0_10 = arith.constant 0 : index
    %23 = vector.load %arg2[%c0_9, %c0_10] : memref<8x24xf32, #tpu.memory_space<vmem>>, vector<8x24xf32>
    %c0_11 = arith.constant 0 : index
    %c0_12 = arith.constant 0 : index
    %24 = vector.load %arg5[%c0_11, %c0_12] : memref<24x128xf32, #tpu.memory_space<vmem>>, vector<24x128xf32>
    %cst_13 = arith.constant dense<0.000000e+00> : vector<8x128xf32>
    %25 = tpu.matmul %23, %24, %cst_13 {dimension_numbers = #tpu.dot_dimension_numbers<[1], [0], [0], [1], [0, 0, 1, 1], [], []>} : vector<8x24xf32>, vector<24x128xf32>, vector<8x128xf32> -> vector<8x128xf32>
    %c0_14 = arith.constant 0 : index
    %c0_15 = arith.constant 0 : index
    %26 = vector.load %arg6[%c0_14, %c0_15] : memref<1x128xf32, #tpu.memory_space<vmem>>, vector<1x128xf32>
    %27 = vector.broadcast %26 : vector<1x128xf32> to vector<8x128xf32>
    %28 = arith.addf %25, %27 : vector<8x128xf32>
    %cst_16 = arith.constant dense<0.000000e+00> : vector<8xf32>
    %29 = vector.multi_reduction <add>, %28, %cst_16 [1] : vector<8x128xf32> to vector<8xf32>
    %30 = vector.shape_cast %29 : vector<8xf32> to vector<8x1xf32>
    %cst_17 = arith.constant 6.250000e-02 : f32
    %31 = vector.broadcast %cst_17 : f32 to vector<8x1xf32>
    %32 = arith.mulf %30, %31 : vector<8x1xf32>
    %33 = tpu.iota {dimensions = array<i32: 1>} : vector<8x128xi32>
    %c16_i32 = arith.constant 16 : i32
    %34 = vector.broadcast %c16_i32 : i32 to vector<8x128xi32>
    %35 = arith.cmpi slt, %33, %34 : vector<8x128xi32>
    %36 = vector.broadcast %32 : vector<8x1xf32> to vector<8x128xf32>
    %37 = arith.subf %28, %36 : vector<8x128xf32>
    %cst_18 = arith.constant 0.000000e+00 : f32
    %38 = vector.broadcast %cst_18 : f32 to vector<8x128xf32>
    %39 = arith.select %35, %37, %38 : vector<8x128xi1>, vector<8x128xf32>
    %40 = arith.mulf %39, %39 : vector<8x128xf32>
    %cst_19 = arith.constant dense<0.000000e+00> : vector<8xf32>
    %41 = vector.multi_reduction <add>, %40, %cst_19 [1] : vector<8x128xf32> to vector<8xf32>
    %42 = vector.shape_cast %41 : vector<8xf32> to vector<8x1xf32>
    %cst_20 = arith.constant 6.250000e-02 : f32
    %43 = vector.broadcast %cst_20 : f32 to vector<8x1xf32>
    %44 = arith.mulf %42, %43 : vector<8x1xf32>
    %cst_21 = arith.constant 9.99999974E-6 : f32
    %45 = vector.broadcast %cst_21 : f32 to vector<8x1xf32>
    %46 = arith.addf %44, %45 : vector<8x1xf32>
    %47 = math.rsqrt %46 : vector<8x1xf32>
    %48 = vector.broadcast %47 : vector<8x1xf32> to vector<8x128xf32>
    %49 = arith.mulf %39, %48 : vector<8x128xf32>
    %c0_22 = arith.constant 0 : index
    %c0_23 = arith.constant 0 : index
    %50 = vector.load %arg7[%c0_22, %c0_23] : memref<1x128xf32, #tpu.memory_space<vmem>>, vector<1x128xf32>
    %51 = vector.broadcast %50 : vector<1x128xf32> to vector<8x128xf32>
    %52 = arith.mulf %49, %51 : vector<8x128xf32>
    %c0_24 = arith.constant 0 : index
    %c0_25 = arith.constant 0 : index
    %53 = vector.load %arg8[%c0_24, %c0_25] : memref<1x128xf32, #tpu.memory_space<vmem>>, vector<1x128xf32>
    %54 = vector.broadcast %53 : vector<1x128xf32> to vector<8x128xf32>
    %55 = arith.addf %52, %54 : vector<8x128xf32>
    %56 = arith.truncf %22 : vector<8x32xf32> to vector<8x32xbf16>
    %c0_26 = arith.constant 0 : index
    %c0_27 = arith.constant 0 : index
    %57 = vector.load %arg9[%c0_26, %c0_27] : memref<32x128xbf16, #tpu.memory_space<vmem>>, vector<32x128xbf16>
    %cst_28 = arith.constant dense<0.000000e+00> : vector<8x128xf32>
    %58 = tpu.matmul %56, %57, %cst_28 {dimension_numbers = #tpu.dot_dimension_numbers<[1], [0], [0], [1], [0, 0, 1, 1], [], []>} : vector<8x32xbf16>, vector<32x128xbf16>, vector<8x128xf32> -> vector<8x128xf32>
    %59 = arith.truncf %55 : vector<8x128xf32> to vector<8x128xbf16>
    %c0_29 = arith.constant 0 : index
    %c0_30 = arith.constant 0 : index
    %60 = vector.load %arg10[%c0_29, %c0_30] : memref<128x128xbf16, #tpu.memory_space<vmem>>, vector<128x128xbf16>
    %cst_31 = arith.constant dense<0.000000e+00> : vector<8x128xf32>
    %61 = tpu.matmul %59, %60, %cst_31 {dimension_numbers = #tpu.dot_dimension_numbers<[1], [0], [0], [1], [0, 0, 1, 1], [], []>} : vector<8x128xbf16>, vector<128x128xbf16>, vector<8x128xf32> -> vector<8x128xf32>
    %62 = arith.addf %58, %61 : vector<8x128xf32>
    %c0_32 = arith.constant 0 : index
    %c0_33 = arith.constant 0 : index
    %63 = vector.load %arg11[%c0_32, %c0_33] : memref<1x128xf32, #tpu.memory_space<vmem>>, vector<1x128xf32>
    %64 = vector.broadcast %63 : vector<1x128xf32> to vector<8x128xf32>
    %65 = arith.addf %62, %64 : vector<8x128xf32>
    %cst_34 = arith.constant 0.000000e+00 : f32
    %66 = vector.broadcast %cst_34 : f32 to vector<8x128xf32>
    %67 = arith.maximumf %65, %66 : vector<8x128xf32>
    %68 = arith.truncf %67 : vector<8x128xf32> to vector<8x128xbf16>
    %c0_35 = arith.constant 0 : index
    %c0_36 = arith.constant 0 : index
    %69 = vector.load %arg12[%c0_35, %c0_36] : memref<128x128xbf16, #tpu.memory_space<vmem>>, vector<128x128xbf16>
    %cst_37 = arith.constant dense<0.000000e+00> : vector<8x128xf32>
    %70 = tpu.matmul %68, %69, %cst_37 {dimension_numbers = #tpu.dot_dimension_numbers<[1], [0], [0], [1], [0, 0, 1, 1], [], []>} : vector<8x128xbf16>, vector<128x128xbf16>, vector<8x128xf32> -> vector<8x128xf32>
    %c0_38 = arith.constant 0 : index
    %c0_39 = arith.constant 0 : index
    %71 = vector.load %arg13[%c0_38, %c0_39] : memref<1x128xf32, #tpu.memory_space<vmem>>, vector<1x128xf32>
    %72 = vector.broadcast %71 : vector<1x128xf32> to vector<8x128xf32>
    %73 = arith.addf %70, %72 : vector<8x128xf32>
    %c0_40 = arith.constant 0 : index
    %c0_41 = arith.constant 0 : index
    %74 = vector.load %arg14[%c0_40, %c0_41] : memref<8x128xf32, #tpu.memory_space<vmem>>, vector<8x128xf32>
    tpu.vector_store %arg14[%c0_40, %c0_41], %73 {strides = array<i32>} : memref<8x128xf32, #tpu.memory_space<vmem>>, vector<8x128xf32>,
    return
  }
  func.func @transform_0(%arg0: i32) -> (i32, i32) {
    %c0_i32 = arith.constant 0 : i32
    %c0_i32_0 = arith.constant 0 : i32
    return %arg0, %c0_i32 : i32, i32
  }
  func.func @transform_1(%arg0: i32) -> (i32, i32) {
    %c0_i32 = arith.constant 0 : i32
    %c0_i32_0 = arith.constant 0 : i32
    return %arg0, %c0_i32 : i32, i32
  }
  func.func @transform_2(%arg0: i32) -> (i32, i32) {
    %c0_i32 = arith.constant 0 : i32
    %c0_i32_0 = arith.constant 0 : i32
    %c0_i32_1 = arith.constant 0 : i32
    return %c0_i32, %c0_i32_0 : i32, i32
  }
  func.func @transform_3(%arg0: i32) -> (i32, i32) {
    %c0_i32 = arith.constant 0 : i32
    %c0_i32_0 = arith.constant 0 : i32
    %c0_i32_1 = arith.constant 0 : i32
    return %c0_i32, %c0_i32_0 : i32, i32
  }
  func.func @transform_4(%arg0: i32) -> (i32, i32) {
    %c0_i32 = arith.constant 0 : i32
    %c0_i32_0 = arith.constant 0 : i32
    %c0_i32_1 = arith.constant 0 : i32
    return %c0_i32, %c0_i32_0 : i32, i32
  }
  func.func @transform_5(%arg0: i32) -> (i32, i32) {
    %c0_i32 = arith.constant 0 : i32
    %c0_i32_0 = arith.constant 0 : i32
    %c0_i32_1 = arith.constant 0 : i32
    return %c0_i32, %c0_i32_0 : i32, i32
  }
  func.func @transform_6(%arg0: i32) -> (i32, i32) {
    %c0_i32 = arith.constant 0 : i32
    %c0_i32_0 = arith.constant 0 : i32
    %c0_i32_1 = arith.constant 0 : i32
    return %c0_i32, %c0_i32_0 : i32, i32
  }
  func.func @transform_7(%arg0: i32) -> (i32, i32) {
    %c0_i32 = arith.constant 0 : i32
    %c0_i32_0 = arith.constant 0 : i32
    %c0_i32_1 = arith.constant 0 : i32
    return %c0_i32, %c0_i32_0 : i32, i32
  }
  func.func @transform_8(%arg0: i32) -> (i32, i32) {
    %c0_i32 = arith.constant 0 : i32
    %c0_i32_0 = arith.constant 0 : i32
    %c0_i32_1 = arith.constant 0 : i32
    return %c0_i32, %c0_i32_0 : i32, i32
  }
  func.func @transform_9(%arg0: i32) -> (i32, i32) {
    %c0_i32 = arith.constant 0 : i32
    %c0_i32_0 = arith.constant 0 : i32
    %c0_i32_1 = arith.constant 0 : i32
    return %c0_i32, %c0_i32_0 : i32, i32
  }
  func.func @transform_10(%arg0: i32) -> (i32, i32) {
    %c0_i32 = arith.constant 0 : i32
    %c0_i32_0 = arith.constant 0 : i32
    %c0_i32_1 = arith.constant 0 : i32
    return %c0_i32, %c0_i32_0 : i32, i32
  }
  func.func @transform_11(%arg0: i32) -> (i32, i32) {
    %c0_i32 = arith.constant 0 : i32
    %c0_i32_0 = arith.constant 0 : i32
    %c0_i32_1 = arith.constant 0 : i32
    return %c0_i32, %c0_i32_0 : i32, i32
  }
  func.func @transform_12(%arg0: i32) -> (i32, i32) {
    %c0_i32 = arith.constant 0 : i32
    %c0_i32_0 = arith.constant 0 : i32
    %c0_i32_1 = arith.constant 0 : i32
    return %c0_i32, %c0_i32_0 : i32, i32
  }
  func.func @transform_13(%arg0: i32) -> (i32, i32) {
    %c0_i32 = arith.constant 0 : i32
    %c0_i32_0 = arith.constant 0 : i32
    return %arg0, %c0_i32 : i32, i32
  }
}

</mosaic_0001>

<bundles_post_ra>
// kernel: tpu_custom_call.1
= control target key start
LH: loop header
LB: loop body
LE: loop exit
PB: predicated region body
PF: predicated region fallthrough
CT: control target
= control target key end

     0   :  { %18 = vsyncpa [#allocation3], 0  ;;  %s1081_s0 = inlined_call_operand.hbm [shape: f32[8,32], index: 0, kind: input, shape index: {}]   ;;  %s1082_s1 = inlined_call_operand.hbm [shape: f32[8,24], index: 1, kind: input, shape index: {}]   ;;  %s1083_s2 = inlined_call_operand.vmem [shape: f32[1,32], index: 2, kind: input, shape index: {}]   ;;  %s1084_s3 = inlined_call_operand.vmem [shape: f32[1,32], index: 3, kind: input, shape index: {}]   ;;  %s1085_s4 = inlined_call_operand.hbm [shape: f32[24,128], index: 4, kind: input, shape index: {}]   ;;  %s1086_s5 = inlined_call_operand.vmem [shape: f32[1,128], index: 5, kind: input, shape index: {}]   ;;  %s1087_s6 = inlined_call_operand.vmem [shape: f32[1,128], index: 6, kind: input, shape index: {}]   ;;  %s1088_s7 = inlined_call_operand.vmem [shape: f32[1,128], index: 7, kind: input, shape index: {}]   ;;  %s1089_s8 = inlined_call_operand.vmem [shape: bf16[32,128], index: 8, kind: input, shape index: {}]   ;;  %s1090_s9 = inlined_call_operand.hbm [shape: bf16[128,128], index: 9, kind: input, shape index: {}]   ;;  %s1091_s10 = inlined_call_operand.vmem [shape: f32[1,128], index: 10, kind: input, shape index: {}]   ;;  %s1092_s11 = inlined_call_operand.hbm [shape: bf16[128,128], index: 11, kind: input, shape index: {}]   ;;  %s1093_s12 = inlined_call_operand.vmem [shape: f32[1,128], index: 12, kind: input, shape index: {}]   ;;  %s1094_s13 = inlined_call_operand.hbm [shape: f32[8,128], index: 13, kind: output, shape index: {}]  }
   0x1   :  { %19 = vsyncpa [#allocation6], 0 }
   0x2   :  { %20 = vsyncpa [#allocation9], 0 }
   0x3   :  { %21 = vsyncpa [#allocation4], 0  ;;  %s849_s25 = smov [#allocation5]   ;;  %s850_s27 = smov [#allocation8]  }
   0x4   :  { %s38_s26 = sshll.u32 %s849_s25, 4  ;;  %s71_s28 = sshll.u32 %s850_s27, 4  ;;  %s39_s26 = int_to_ptr.vmem [resolvable:$true] %s38_s26  ;;  %s932_s28 = int_to_ptr.vmem [resolvable:$true] %s71_s28 }
   0x5   :  { %s709_s14 = scalar_lea.hbm %s1082_s1, 128 }
   0x6   :  { %p710_p0 = scmp.ne.s32.totalorder %s1082_s1, %s709_s14  ;;  %p713_p1 = scmp.lt.u32.totalorder %s709_s14, %s1082_s1 }
   0x8   :  { %p715_p2 = pnand %p713_p1, %p710_p0 }
   0xa   :  { %718 = shalt.err (!%p715_p2)
}
   0xb   :  { %s719_s19 = scalar_lea.vmem %s39_s26, 128  ;;  %p724_p4 = scmp.lt.s32.totalorder %s39_s26, %s39_s26 }
   0xc   :  { %p720_p3 = scmp.ne.s32.totalorder %s39_s26, %s719_s19  ;;  %p725_p5 = scmp.lt.s32.totalorder %s719_s19, %s719_s19 }
   0xe   :  { %p726_p6 = por %p725_p5, %p724_p4 }
  0x10   :  { %p727_p7 = pnand %p726_p6, %p720_p3 }
  0x12   :  { %730 = shalt.err (!%p727_p7)
}
  0x13   :  { %41 = dma.hbm_to_vmem [thread:$0]  %s1082_s1, 128, %s39_s26, [#allocation6]  }
  0x14   :  { %s731_s24 = scalar_lea.hbm %s1090_s9, 1024 }
  0x15   :  { %p732_p8 = scmp.ne.s32.totalorder %s1090_s9, %s731_s24  ;;  %p735_p9 = scmp.lt.u32.totalorder %s731_s24, %s1090_s9 }
  0x17   :  { %p737_p10 = pnand %p735_p9, %p732_p8 }
  0x19   :  { %740 = shalt.err (!%p737_p10)
}
  0x1a   :  { %s741_s14 = scalar_lea.vmem %s932_s28, 1024  ;;  %p746_p12 = scmp.lt.s32.totalorder %s932_s28, %s932_s28 }
  0x1b   :  { %p742_p11 = scmp.ne.s32.totalorder %s932_s28, %s741_s14  ;;  %p747_p13 = scmp.lt.s32.totalorder %s741_s14, %s741_s14 }
  0x1d   :  { %p748_p0 = por %p747_p13, %p746_p12 }
  0x1f   :  { %p749_p1 = pnand %p748_p0, %p742_p11 }
  0x21   :  { %752 = shalt.err (!%p749_p1)
}
  0x22   :  { %s851_s1 = smov 64   ;;  %s852_s26 = smov 4  }
  0x23   :  { %77 = dma.hbm_to_vmem [thread:$0]  %s1090_s9, 1024, %s932_s28, [#allocation9], %s851_s1, %s851_s1, %s852_s26  }
  0x24   :  { %s853_s17 = smov [#allocation2]   ;;  %s854_s19 = smov [#allocation7]  }
  0x25   :  { %s28_s18 = sshll.u32 %s853_s17, 4  ;;  %s51_s20 = sshll.u32 %s854_s19, 4  ;;  %s29_s18 = int_to_ptr.vmem [resolvable:$true] %s28_s18  ;;  %s966_s20 = int_to_ptr.vmem [resolvable:$true] %s51_s20 }
  0x26   :  { %s753_s23 = scalar_lea.hbm %s1081_s0, 128 }
  0x27   :  { %p754_p2 = scmp.ne.s32.totalorder %s1081_s0, %s753_s23  ;;  %p757_p3 = scmp.lt.u32.totalorder %s753_s23, %s1081_s0 }
  0x29   :  { %p759_p4 = pnand %p757_p3, %p754_p2 }
  0x2b   :  { %762 = shalt.err (!%p759_p4)
}
  0x2c   :  { %s763_s9 = scalar_lea.vmem %s29_s18, 128  ;;  %p768_p6 = scmp.lt.s32.totalorder %s29_s18, %s29_s18 }
  0x2d   :  { %p764_p5 = scmp.ne.s32.totalorder %s29_s18, %s763_s9  ;;  %p769_p7 = scmp.lt.s32.totalorder %s763_s9, %s763_s9 }
  0x2f   :  { %p770_p8 = por %p769_p7, %p768_p6 }
  0x31   :  { %p771_p9 = pnand %p770_p8, %p764_p5 }
  0x33   :  { %774 = shalt.err (!%p771_p9)
}
  0x34   :  { %31 = dma.hbm_to_vmem [thread:$0]  %s1081_s0, 128, %s29_s18, [#allocation3]  }
  0x35   :  { %s775_s16 = scalar_lea.hbm %s1085_s4, 384 }
  0x36   :  { %p776_p10 = scmp.ne.s32.totalorder %s1085_s4, %s775_s16  ;;  %p779_p11 = scmp.lt.u32.totalorder %s775_s16, %s1085_s4 }
  0x38   :  { %p781_p12 = pnand %p779_p11, %p776_p10 }
  0x3a   :  { %784 = shalt.err (!%p781_p12)
}
  0x3b   :  { %s785_s23 = scalar_lea.vmem %s966_s20, 384  ;;  %p790_p0 = scmp.lt.s32.totalorder %s966_s20, %s966_s20 }
  0x3c   :  { %p786_p13 = scmp.ne.s32.totalorder %s966_s20, %s785_s23  ;;  %p791_p1 = scmp.lt.s32.totalorder %s785_s23, %s785_s23 }
  0x3e   :  { %p792_p2 = por %p791_p1, %p790_p0 }
  0x40   :  { %p793_p3 = pnand %p792_p2, %p786_p13 }
  0x42   :  { %796 = shalt.err (!%p793_p3)
}
  0x43   :  { %s855_s0 = smov 128   ;;  %s856_s18 = smov 8  }
  0x44   :  { %57 = dma.hbm_to_vmem [thread:$0]  %s1085_s4, 384, %s966_s20, [#allocation6], %s855_s0, %s855_s0, %s856_s18  }
  0x45   :  { %s857_s27 = smov [#allocation10]   ;;  %s797_s30 = scalar_lea.hbm %s1092_s11, 1024 }
  0x46   :  { %s85_s29 = sshll.u32 %s857_s27, 4  ;;  %p798_p4 = scmp.ne.s32.totalorder %s1092_s11, %s797_s30  ;;  %s86_s29 = int_to_ptr.vmem [resolvable:$true] %s85_s29 }
  0x47   :  { %p801_p5 = scmp.lt.u32.totalorder %s797_s30, %s1092_s11 }
  0x49   :  { %p803_p6 = pnand %p801_p5, %p798_p4 }
  0x4b   :  { %806 = shalt.err (!%p803_p6)
}
  0x4c   :  { %s807_s19 = scalar_lea.vmem %s86_s29, 1024  ;;  %p812_p8 = scmp.lt.s32.totalorder %s86_s29, %s86_s29 }
  0x4d   :  { %p808_p7 = scmp.ne.s32.totalorder %s86_s29, %s807_s19  ;;  %p813_p9 = scmp.lt.s32.totalorder %s807_s19, %s807_s19 }
  0x4f   :  { %p814_p10 = por %p813_p9, %p812_p8 }
  0x51   :  { %p815_p11 = pnand %p814_p10, %p808_p7 }
  0x53   :  { %818 = shalt.err (!%p815_p11)
}
  0x54   :  { %91 = dma.hbm_to_vmem [thread:$0]  %s1092_s11, 1024, %s86_s29, [#allocation9], %s851_s1, %s851_s1, %s852_s26  }
  0x55   :  { %841 = dma.done.wait [#allocation3], 128  }
  0x56   :  { %842 = vsyncadd [#allocation3], 4294967168 }
  0x57   :  { %843 = dma.done.wait [#allocation6], 512  }
  0x58   :  { %844 = vsyncadd [#allocation6], 4294966784 }
  0x59   :  { %845 = dma.done.wait [#allocation9], 2048  }
  0x5a   :  { %846 = vsyncadd [#allocation9], 4294965248  ;;  %v858_v0 = vmov 0.0|0.0   ;;  %vm859_vm0 = vmmov 0   ;;  %v860_v1 = vmov 0.0   ;;  %vm111_vm1 = vcmask 261120  }
  0x5b   :  { %671 = vmatprep.subr.bf16.mxu1 %v858_v0  ;;  %620 = vmatprep.mubr.msk.f32.mxu1 %vm859_vm0, %v860_v1  ;;  %v143_v2 = vld [vmem:[#allocation7] sm:$0xff]  ;;  %v144_v3 = vld [vmem:[#allocation7 + $0x8] sm:$0xff]  ;;  %vm153_vm2 = vcmask 195584   ;;  %v110_v5 = vld [vmem:[#allocation2] sm:$0xff]  ;;  %v230_v32 = vlaneseq  ;;  %s861_s9 = smov [#allocation11]  }
  0x5c   :  { %643 = vmatprep.subr.bf16.mxu0 %v860_v1  ;;  %647 = vmatprep.mubr.msk.bf16.mxu0 %vm859_vm0, %v860_v1  ;;  %v672_v4 = vpack.c.bf16 %v144_v3, %v143_v2  ;;  %v145_v6 = vld [vmem:[#allocation7 + $0x10] sm:$0xff]  ;;  %v112_v7 = vsel %vm111_vm1, %v110_v5, 0.0  ;;  %v142_v8 = vld [vmem:[#allocation5] sm:$0xff]  ;;  %v687_v14 = vld [vmem:[%s1089_s8] sm:$0xff]   ;;  %s551_s28 = sshll.u32 %s861_s9, 4  ;;  %s552_s28 = int_to_ptr.vmem [resolvable:$true] %s551_s28 }
  0x5d   :  { %113 = vadd.xlane.f32.xlu0 %v112_v7  ;;  %644 = vmatpush3.bf16.msra.mxu0 %v687_v14  ;;  %v564_v15 = vld [vmem:[%s1086_s5] ss:$0 sm:$0xff]  ;;  %v688_v19 = vld [vmem:[%s1089_s8 + $0x8] sm:$0xff]   ;;  %v689_v20 = vld [vmem:[#allocation8] sm:$0xff]   ;;  %v231_v33 = vand.u32 127, %v230_v32  ;;  %p824_p13 = scmp.lt.s32.totalorder %s552_s28, %s552_s28 }
  0x5e   :  { %673 = vmatpush3.bf16.msra.mxu1 %v672_v4  ;;  %645 = vmatprep.subr.bf16.mxu0 %v860_v1  ;;  %v690_v21 = vld [vmem:[#allocation8 + $0x8] sm:$0xff]   ;;  %v691_v39 = vld [vmem:[#allocation8 + $0x10] sm:$0xff]   ;;  %v692_v40 = vld [vmem:[#allocation8 + $0x18] sm:$0xff]  }
  0x5f   :  { %618 = vmatprep.subr.mxu1 %v860_v1  ;;  %v562_v26 = vld [vmem:[%s1083_s2] ss:$0 sm:$0xff]  ;;  %vm232_vm3 = vcmp.lt.s32.totalorder %v231_v33, 16  ;;  %v693_v41 = vld [vmem:[#allocation8 + $0x20] sm:$0xff]   ;;  %v695_v43 = vld [vmem:[#allocation8 + $0x30] sm:$0xff]  }
  0x60   :  { %v563_v28 = vld [vmem:[%s1084_s3] ss:$0 sm:$0xff]  ;;  %v696_v44 = vld [vmem:[#allocation8 + $0x38] sm:$0xff]   ;;  %v697_v45 = vld [vmem:[#allocation10] sm:$0xff]  }
  0x61   :  { %646 = vmatpush3.bf16.msra.mxu0 %v688_v19  ;;  %v694_v42 = vld [vmem:[#allocation8 + $0x28] sm:$0xff]   ;;  %v699_v47 = vld [vmem:[#allocation10 + $0x10] sm:$0xff]   ;;  %v700_v48 = vld [vmem:[#allocation10 + $0x18] sm:$0xff]  }
  0x62   :  { %619 = vmatpush3.msra.mxu1 %v145_v6  ;;  %651 = vmatprep.subr.bf16.mxu0 %v860_v1  ;;  %v698_v46 = vld [vmem:[#allocation10 + $0x8] sm:$0xff]   ;;  %v701_v49 = vld [vmem:[#allocation10 + $0x20] sm:$0xff]   ;;  %v703_v2 = vld [vmem:[#allocation10 + $0x30] sm:$0xff]  }
  0x63   :  { %621 = vmatmul.mubr.msk.f32.vlgmr.msra.gmra.mrb[0].mxu1 %vm153_vm2, %v142_v8  ;;  %623 = vmatprep.subr.bf16.mxu1 %v860_v1  ;;  %v702_v50 = vld [vmem:[#allocation10 + $0x28] sm:$0xff]   ;;  %v704_v3 = vld [vmem:[#allocation10 + $0x38] sm:$0xff]  }
  0x64   :  { %639 = vmatprep.mubr.msk.bf16.mxu1 %vm859_vm0, %v860_v1  ;;  %624 = vmatpush3.bf16.msra.mxu1 %v689_v20  ;;  %v566_v55 = vld [vmem:[%s1087_s6] ss:$0 sm:$0xff] }
  0x65   :  { %625 = vmatprep.subr.bf16.mxu1 %v860_v1  ;;  %v567_v58 = vld [vmem:[%s1088_s7] ss:$0 sm:$0xff] }
  0x68   :  { %626 = vmatpush3.bf16.msra.mxu1 %v690_v21 }
  0x69   :  { %627 = vmatprep.subr.bf16.mxu1 %v860_v1 }
  0x6c   :  { %628 = vmatpush3.bf16.msra.mxu1 %v691_v39 }
  0x6d   :  { %629 = vmatprep.subr.bf16.mxu1 %v860_v1 }
  0x70   :  { %630 = vmatpush3.bf16.msra.mxu1 %v692_v40 }
  0x71   :  { %631 = vmatprep.subr.bf16.mxu1 %v860_v1 }
  0x74   :  { %632 = vmatpush3.bf16.msra.mxu1 %v693_v41 }
  0x75   :  { %633 = vmatprep.subr.bf16.mxu1 %v860_v1 }
  0x78   :  { %634 = vmatpush3.bf16.msra.mxu1 %v694_v42 }
  0x79   :  { %635 = vmatprep.subr.bf16.mxu1 %v860_v1 }
  0x7c   :  { %636 = vmatpush3.bf16.msra.mxu1 %v695_v43 }
  0x7d   :  { %637 = vmatprep.subr.bf16.mxu1 %v860_v1 }
  0x80   :  { %638 = vmatpush3.bf16.msra.mxu1 %v696_v44 }
  0xea   :  { %v114_v9 = vpop.xlane.xlu0 %113 }
  0xeb   :  { %v116_v10 = vmul.f32 0.03125, %v114_v9 }
  0xed   :  { %v117_v11 = vsub.f32 %v110_v5, %v116_v10  ;;  %v579_v5 = vld [vmem:[%s1091_s10] ss:$0 sm:$0xff]  ;;  %s819_s10 = scalar_lea.vmem %s552_s28, 128 }
  0xee   :  { %p820_p12 = scmp.ne.s32.totalorder %s552_s28, %s819_s10  ;;  %p825_p0 = scmp.lt.s32.totalorder %s819_s10, %s819_s10 }
  0xef   :  { %v118_v12 = vmul.f32 %v117_v11, %v117_v11 }
  0xf0   :  { %p826_p1 = por %p825_p0, %p824_p13 }
  0xf1   :  { %v119_v13 = vsel %vm111_vm1, %v118_v12, 0.0 }
  0xf2   :  { %120 = vadd.xlane.f32.xlu1 %v119_v13  ;;  %v580_v13 = vld [vmem:[%s1093_s12] ss:$0 sm:$0xff]  ;;  %p827_p2 = pnand %p826_p1, %p820_p12 }
 0x136   :  { %v223_v16 = vpop.f32.mrb[0].mxu1 }
 0x137   :  { %v224_v17 = vadd.f32 %v564_v15, %v223_v16  ;;  %v622_v18 = vpop.f32.mrb[1].mxu1 }
 0x139   :  { %227 = vadd.xlane.f32.xlu0 %v224_v17 }
 0x17f   :  { %v121_v22 = vpop.xlane.xlu1 %120 }
 0x180   :  { %v122_v23 = vmul.f32 0.03125, %v121_v22 }
 0x182   :  { %v123_v24 = vadd.f32 1e-05, %v122_v23 }
 0x184   :  { %705 = vrsqrt.f32 %v123_v24 }
 0x18e   :  { %v706_v25 = vpop.eup %705 }
 0x18f   :  { %v125_v27 = vmul.f32 %v706_v25, %v117_v11 }
 0x191   :  { %v133_v29 = vmul.f32 %v562_v26, %v125_v27 }
 0x193   :  { %v141_v30 = vadd.f32 %v563_v28, %v133_v29 }
 0x195   :  { %v258_v31 = vpack.c.bf16 %v141_v30, %v141_v30 }
 0x197   :  { %648 = vmatmul.mubr.msk.bf16.vlgmr.msra.gmra.mrb[0].mxu0 %vm111_vm1, %v258_v31 }
 0x198   :  { %667 = vmatprep.mubr.msk.bf16.mxu0 %vm859_vm0, %v860_v1  ;;  %652 = vmatpush3.bf16.msra.mxu0 %v697_v45 }
 0x199   :  { %653 = vmatprep.subr.bf16.mxu0 %v860_v1 }
 0x19c   :  { %654 = vmatpush3.bf16.msra.mxu0 %v698_v46 }
 0x19d   :  { %655 = vmatprep.subr.bf16.mxu0 %v860_v1 }
 0x1a0   :  { %656 = vmatpush3.bf16.msra.mxu0 %v699_v47 }
 0x1a1   :  { %657 = vmatprep.subr.bf16.mxu0 %v860_v1 }
 0x1a4   :  { %658 = vmatpush3.bf16.msra.mxu0 %v700_v48 }
 0x1a5   :  { %659 = vmatprep.subr.bf16.mxu0 %v860_v1 }
 0x1a8   :  { %660 = vmatpush3.bf16.msra.mxu0 %v701_v49 }
 0x1a9   :  { %661 = vmatprep.subr.bf16.mxu0 %v860_v1 }
 0x1ac   :  { %662 = vmatpush3.bf16.msra.mxu0 %v702_v50 }
 0x1ad   :  { %663 = vmatprep.subr.bf16.mxu0 %v860_v1 }
 0x1b0   :  { %664 = vmatpush3.bf16.msra.mxu0 %v703_v2 }
 0x1b1   :  { %665 = vmatprep.subr.bf16.mxu0 %v860_v1 }
 0x1b4   :  { %666 = vmatpush3.bf16.msra.mxu0 %v704_v3 }
 0x1c6   :  { %v228_v34 = vpop.xlane.xlu0 %227 }
 0x1c7   :  { %v229_v35 = vmul.f32 0.0625, %v228_v34 }
 0x1c9   :  { %v233_v36 = vsub.f32 %v224_v17, %v229_v35 }
 0x1cb   :  { %v234_v37 = vsel %vm232_vm3, %v233_v36, 0.0 }
 0x1cc   :  { %v235_v38 = vmul.f32 %v234_v37, %v234_v37 }
 0x1ce   :  { %236 = vadd.xlane.f32.xlu1 %v235_v38 }
 0x25b   :  { %v237_v51 = vpop.xlane.xlu1 %236 }
 0x25c   :  { %v238_v52 = vmul.f32 0.0625, %v237_v51 }
 0x25e   :  { %v239_v53 = vadd.f32 1e-05, %v238_v52 }
 0x260   :  { %707 = vrsqrt.f32 %v239_v53 }
 0x26a   :  { %v708_v54 = vpop.eup %707  ;;  %v417_v57 = vpop.f32.mrb[0].mxu0 }
 0x26b   :  { %v241_v56 = vmul.f32 %v708_v54, %v234_v37  ;;  %v649_v59 = vpop.f32.mrb[1].mxu0 }
 0x26c   :  { %v420_v61 = vpop.f32.mrb[2].mxu0 }
 0x26d   :  { %v249_v60 = vmul.f32 %v566_v55, %v241_v56  ;;  %v650_v62 = vpop.f32.mrb[3].mxu0 }
 0x26f   :  { %v257_v63 = vadd.f32 %v567_v58, %v249_v60 }
 0x271   :  { %v263_v0 = vpack.c.bf16 %v257_v63, %v257_v63 }
 0x273   :  { %640 = vmatmul.mubr.bf16.vlgmr.msra.gmra.mrb[4].mxu1 %v263_v0 }
 0x346   :  { %v362_v4 = vpop.f32.mrb[4].mxu1 }
 0x347   :  { %v418_v6 = vadd.f32 %v417_v57, %v362_v4  ;;  %v641_v7 = vpop.f32.mrb[5].mxu1 }
 0x348   :  { %v365_v8 = vpop.f32.mrb[6].mxu1 }
 0x349   :  { %v430_v9 = vadd.f32 %v579_v5, %v418_v6  ;;  %v642_v10 = vpop.f32.mrb[7].mxu1 }
 0x34b   :  { %v431_v11 = vmax.f32 %v430_v9, 0.0 }
 0x34d   :  { %v432_v12 = vpack.c.bf16 %v431_v11, %v431_v11 }
 0x34f   :  { %668 = vmatmul.mubr.bf16.vlgmr.msra.gmra.mrb[4].mxu0 %v432_v12 }
 0x422   :  { %v538_v1 = vpop.f32.mrb[4].mxu0 }
 0x423   :  { %v539_v14 = vadd.f32 %v580_v13, %v538_v1  ;;  %v669_v15 = vpop.f32.mrb[5].mxu0 }
 0x424   :  { %v541_v16 = vpop.f32.mrb[6].mxu0 }
 0x425   :  { %544 = vst [vmem:[#allocation11] sm:$0xff] %v539_v14  ;;  %v670_v17 = vpop.f32.mrb[7].mxu0 }
 0x426   :  { %830 = shalt.err (!%p827_p2)
}
 0x427   :  { %s831_s12 = scalar_lea.hbm %s1094_s13, 128 }
 0x428   :  { %p832_p3 = scmp.ne.s32.totalorder %s1094_s13, %s831_s12  ;;  %p835_p4 = scmp.lt.u32.totalorder %s831_s12, %s1094_s13 }
 0x42a   :  { %p837_p5 = pnand %p835_p4, %p832_p3 }
 0x42c   :  { %840 = shalt.err (!%p837_p5)
}
 0x42d   :  { %554 = dma.vmem_to_hbm [thread:$0]  %s552_s28, 128, %s1094_s13, [#allocation4]  }
 0x42e   :  { %847 = dma.done.wait [#allocation4], 128  }
 0x42f   :  { %848 = vsyncadd [#allocation4], 4294967168 }
 0x430   :  { %558 = vsyncpa [#allocation3], 1 }
 0x431   :  { %559 = vsyncpa [#allocation6], 1 }
 0x432   :  { %560 = vsyncpa [#allocation9], 1 }
 0x433   :  { %561 = vsyncpa [#allocation4], 1 }

</bundles_post_ra>
